<compile_context>
chip_gen: v6e
topology: v6e:2x2x1
jax: 0.10.0
libtpu: 0.0.40
codegen_flags: <defaults>
</compile_context>

<pallas_src>
import functools
import math

import jax
import jax.numpy as jnp
from jax.experimental import pallas as pl
from jax.experimental.pallas import tpu as pltpu

LANE = 128      # lane width: hidden feature dims pad to this (MXU-friendly)
SUBLANE = 8     # sublane width: the final 1-unit output pads to this


def _round_up(x, m):
    return ((x + m - 1) // m) * m


def _cdiv(a, b):
    return (a + b - 1) // b


# --------------------------------------------------------------------------- #
# Parameters: init once, pad/cast once (outside the per-call path)
# --------------------------------------------------------------------------- #

def init_ddbl_params(key, dims):
    """nn.Linear-style init (U(-1/sqrt(in), 1/sqrt(in))).

    Returns a list of (W, b) with W in PyTorch (out_features, in_features) layout.
    Layers: dims[0]->dims[1], ..., dims[-2]->dims[-1], dims[-1]->1.
    """
    layer_shapes = [(dims[i + 1], dims[i]) for i in range(len(dims) - 1)]
    layer_shapes.append((1, dims[-1]))
    params = []
    for (fan_out, fan_in) in layer_shapes:
        key, kw, kb = jax.random.split(key, 3)
        bound = 1.0 / math.sqrt(fan_in)
        w = jax.random.uniform(kw, (fan_out, fan_in), jnp.float32, -bound, bound)
        b = jax.random.uniform(kb, (fan_out,), jnp.float32, -bound, bound)
        params.append((w, b))
    return params


def prepare_ddbl_params(params, compute_dtype=jnp.bfloat16):
    """Pad / cast the nn.Linear parameters ONCE for the kernel.

    * W -> (out_pad, in_store) in compute_dtype; hidden out dims pad to 128,
      the final 1-unit output pads to 8.  Layer 0 keeps the true input width so
      x never needs feature padding; later layers pad the input width to 128
      (== the previous layer's padded output, so chunk boundaries line up).
    * b -> (out_pad, 1) float32 (bias add stays in f32).
    Zero padding is exact through matmul + bias + ReLU.
    """
    n = len(params)
    ws, bs = [], []
    for l, (w, b) in enumerate(params):
        out_dim, in_dim = w.shape
        is_last = (l == n - 1)
        out_pad = _round_up(out_dim, SUBLANE if is_last else LANE)
        in_store = in_dim if l == 0 else _round_up(in_dim, LANE)
        wp = jnp.pad(w.astype(compute_dtype),
                     ((0, out_pad - out_dim), (0, in_store - in_dim)))
        bp = jnp.pad(b.astype(jnp.float32).reshape(-1, 1),
                     ((0, out_pad - out_dim), (0, 0)))
        ws.append(wp)
        bs.append(bp)
    return tuple(ws), tuple(bs)


# --------------------------------------------------------------------------- #
# Kernel
# --------------------------------------------------------------------------- #

def _make_chunk_kernel(n_layers, final, compute_dtype):
    """Fused body for one chunk of consecutive layers (weights resident in VMEM)."""

    def kernel(*refs):
        # refs = (x_ref, w0, b0, w1, b1, ..., out_ref); batch on the lane axis.
        x_ref = refs[0]
        out_ref = refs[-1]
        prm = refs[1:-1]
        h = x_ref[...].astype(compute_dtype)             # (in, tile)
        for l in range(n_layers):
            w = prm[2 * l][...]                          # (out_pad, in), compute_dtype
            b = prm[2 * l + 1][...]                      # (out_pad, 1),  f32
            acc = jnp.dot(w, h, preferred_element_type=jnp.float32) + b
            if l == n_layers - 1 and final:
                out_ref[...] = acc.astype(out_ref.dtype)  # lane-dense (8, tile) store
            else:
                # ReLU in f32 (correct on all generations; v5e has no bf16 VPU),
                # cast down only for the next MXU pass / HBM writeback.
                h = jnp.maximum(acc, 0.0).astype(compute_dtype)
                if l == n_layers - 1:
                    out_ref[...] = h.astype(out_ref.dtype)

    return kernel


def _run_chunk(h, ws, bs, *, tile, vmem_limit, final):
    """One weight-resident pallas_call covering consecutive layers ws/bs.

    h: (feat_in, B) activation with the batch on the lane axis.  Returns
    (out_rows, B): f32 logits for the final chunk, compute_dtype ReLU
    activations otherwise (padded rows are exact zeros).
    """
    compute_dtype = ws[0].dtype
    n_layers = len(ws)
    feat_in, B = h.shape
    out_rows = ws[-1].shape[0]
    out_dtype = jnp.float32 if final else compute_dtype

    grid = (_cdiv(B, tile),)

    in_specs = [pl.BlockSpec((feat_in, tile), lambda i: (0, i))]
    for w, b in zip(ws, bs):
        # Constant index_map -> params stay resident in VMEM across the grid.
        in_specs.append(pl.BlockSpec(w.shape, lambda i: (0, 0)))
        in_specs.append(pl.BlockSpec(b.shape, lambda i: (0, 0)))
    out_specs = pl.BlockSpec((out_rows, tile), lambda i: (0, i))

    flops = int(2 * grid[0] * tile * sum(w.shape[0] * w.shape[1] for w in ws))
    bytes_accessed = int(
        h.size * h.dtype.itemsize
        + sum(w.size * w.dtype.itemsize + b.size * b.dtype.itemsize
              for w, b in zip(ws, bs))
        + out_rows * B * jnp.dtype(out_dtype).itemsize)

    operands = [h]
    for w, b in zip(ws, bs):
        operands += [w, b]

    return pl.pallas_call(
        _make_chunk_kernel(n_layers, final, compute_dtype),
        out_shape=jax.ShapeDtypeStruct((out_rows, B), out_dtype),
        grid=grid,
        in_specs=in_specs,
        out_specs=out_specs,
        compiler_params=pltpu.CompilerParams(
            # v7x: shard batch tiles across both TensorCores; harmless on v5e/v6e.
            dimension_semantics=("parallel",),
            vmem_limit_bytes=vmem_limit,
        ),
        cost_estimate=pl.CostEstimate(
            flops=flops, transcendentals=0, bytes_accessed=bytes_accessed),
    )(*operands)


# --------------------------------------------------------------------------- #
# Planning: generation-aware tiling, VMEM budget, layer-stack chunking
# --------------------------------------------------------------------------- #

def _chunk_vmem_bytes(ws, bs, lo, hi, n_total, tile, x_itemsize):
    """Conservative VMEM estimate for chunk [lo, hi): resident params counted
    with the auto-pipeline's double buffering (2x), streamed activation blocks
    double-buffered, plus working-set headroom (f32 accumulator + cast copy)."""
    c_item = ws[lo].dtype.itemsize
    param = sum(2 * (ws[l].size * ws[l].dtype.itemsize
                     + bs[l].size * bs[l].dtype.itemsize)
                for l in range(lo, hi))
    in_rows = _round_up(ws[lo].shape[1], SUBLANE)
    in_item = x_itemsize if lo == 0 else c_item
    out_rows = ws[hi - 1].shape[0]
    out_item = 4 if hi == n_total else c_item
    stream = 2 * in_rows * tile * in_item + 2 * out_rows * tile * out_item
    max_feat = max(max(_round_up(ws[l].shape[1], SUBLANE), ws[l].shape[0])
                   for l in range(lo, hi))
    act = 2 * max_feat * tile * (4 + c_item)
    return param + stream + act


def _plan(x, ws, bs, tile_b, max_layers_per_chunk):
    if x.ndim != 2:
        raise ValueError(f"x must be (features, batch), got shape {x.shape}")
    d0, B = x.shape
    if ws[0].shape[1] != d0:
        raise ValueError(f"x has {d0} features but layer 0 expects {ws[0].shape[1]}")

    # --- generation-aware VMEM budget ---------------------------------------
    try:
        vmem_cap = int(pltpu.get_tpu_info().vmem_capacity_bytes)
    except Exception:   # not queryable: assume the smallest budget (v7x, 64 MiB/TC)
        vmem_cap = 64 * 1024 * 1024
    vmem_limit = int(vmem_cap * 0.85)           # ~54 MiB on v7x, ~109 MiB on v5e/v6e
    small_vmem = vmem_cap < 100 * 1024 * 1024   # v7x-like: 64 MiB/TC, 2 TensorCores

    # --- batch tiling ---------------------------------------------------------
    if tile_b is None:
        tile_b = 512 if small_vmem else 1024    # bigger tiles on 128-MiB v5e/v6e
    if tile_b % LANE != 0:
        raise ValueError(f"tile_b must be a multiple of {LANE}, got {tile_b}")
    tile = min(tile_b, _round_up(B, LANE))
    # v7x has 2 TensorCores: ensure >= 2 "parallel" batch tiles whenever B allows.
    if small_vmem and B > LANE and _cdiv(B, tile) < 2:
        tile = max(LANE, _round_up(_cdiv(B, 2), LANE))

    # --- greedy layer-stack chunking under the VMEM budget -------------------
    n = len(ws)
    x_item = x.dtype.itemsize
    chunks = []
    lo = 0
    while lo < n:
        if _chunk_vmem_bytes(ws, bs, lo, lo + 1, n, tile, x_item) > vmem_limit:
            # TODO(synk): add an output-feature grid split for single layers whose
            # resident (double-buffered) weights alone exceed the per-core VMEM budget.
            raise ValueError(
                f"layer {lo} alone exceeds the VMEM budget "
                f"({vmem_limit / 2**20:.1f} MiB); feature-dim tiling not implemented")
        hi = lo + 1
        while hi < n and (max_layers_per_chunk is None
                          or hi - lo < max_layers_per_chunk):
            if _chunk_vmem_bytes(ws, bs, lo, hi + 1, n, tile, x_item) > vmem_limit:
                break
            hi += 1
        chunks.append((lo, hi))
        lo = hi
    return tile, tuple(chunks), vmem_limit


# --------------------------------------------------------------------------- #
# Forward
# --------------------------------------------------------------------------- #

@functools.partial(jax.jit, static_argnames=("tile", "chunks", "vmem_limit"))
def _ddbl_forward_jit(x, ws, bs, *, tile, chunks, vmem_limit):
    n = len(ws)
    h = x
    for (lo, hi) in chunks:
        h = _run_chunk(h, ws[lo:hi], bs[lo:hi],
                       tile=tile, vmem_limit=vmem_limit, final=(hi == n))
    # h: (8, B) f32; row 0 holds the single real output unit.
    return jnp.transpose(h[:1, :])               # (B, 1), matches PyTorch output


def ddbl_forward(x, prepared, *, tile_b=None, max_layers_per_chunk=None):
    """x: (dims[0], B), exactly as fed to the PyTorch module (it transposes internally).

    `prepared` = prepare_ddbl_params(params, compute_dtype).  `max_layers_per_chunk`
    is only for testing the chunked fallback path.
    """
    ws, bs = prepared
    tile, chunks, vmem_limit = _plan(x, ws, bs, tile_b, max_layers_per_chunk)
    return _ddbl_forward_jit(x, ws, bs, tile=tile, chunks=chunks,
                             vmem_limit=vmem_limit)


def ddbl_reference(x, params, compute_dtype=jnp.float32):
    """Pure-JAX reference matching the PyTorch forward.  With
    compute_dtype=jnp.bfloat16 it mirrors the kernel's bf16-input / f32-accumulate
    matmul numerics."""
    h = jnp.transpose(x).astype(jnp.float32)
    n = len(params)
    for i, (w, b) in enumerate(params):
        h = jnp.dot(h.astype(compute_dtype), jnp.transpose(w).astype(compute_dtype),
                    preferred_element_type=jnp.float32) + b
        if i < n - 1:
            h = jnp.maximum(h, 0.0)
    return h


if __name__ == "__main__":
    dims = [32, 64, 32]   # module builds Linear(32,64), Linear(64,32), Linear(32,1)
    batch = 16

    key = jax.random.PRNGKey(0)
    key, kx = jax.random.split(key)
    # The PyTorch forward receives x of shape (features, batch) and transposes it.
    x = jax.random.normal(kx, (dims[0], batch), jnp.float32)
    params = init_ddbl_params(key, dims)

    prep_f32 = prepare_ddbl_params(params, compute_dtype=jnp.float32)
    prep_bf16 = prepare_ddbl_params(params, compute_dtype=jnp.bfloat16)

    ref_f32 = ddbl_reference(x, params, compute_dtype=jnp.float32)
    ref_bf16 = ddbl_reference(x, params, compute_dtype=jnp.bfloat16)

    # 1) f32 compute path: tight check against the pure-JAX reference.
    out_f32 = jax.block_until_ready(ddbl_forward(x, prep_f32))
    assert out_f32.shape == (batch, 1), out_f32.shape
    assert jnp.allclose(out_f32, ref_f32, atol=1e-5, rtol=1e-5), (
        float(jnp.max(jnp.abs(out_f32 - ref_f32))))

    # 2) Default bf16-MXU path: check against a reference using the same numerics.
    out_bf16 = jax.block_until_ready(ddbl_forward(x, prep_bf16))
    assert out_bf16.shape == (batch, 1), out_bf16.shape
    assert jnp.allclose(out_bf16, ref_bf16, atol=2e-3, rtol=2e-3), (
        float(jnp.max(jnp.abs(out_bf16 - ref_bf16))))

    # 3) Forced layer-stack chunking: exercises the multi-pallas_call fallback.
    out_chunked = jax.block_until_ready(
        ddbl_forward(x, prep_f32, max_layers_per_chunk=1))
    assert jnp.allclose(out_chunked, ref_f32, atol=1e-5, rtol=1e-5), (
        float(jnp.max(jnp.abs(out_chunked - ref_f32))))

    # 4) Ragged multi-tile batch: exercises the cdiv grid + masked edge writeback.
    batch2 = 200
    key, kx2 = jax.random.split(key)
    x2 = jax.random.normal(kx2, (dims[0], batch2), jnp.float32)
    out2 = jax.block_until_ready(ddbl_forward(x2, prep_f32, tile_b=128))
    ref2 = ddbl_reference(x2, params, compute_dtype=jnp.float32)
    assert out2.shape == (batch2, 1), out2.shape
    assert jnp.allclose(out2, ref2, atol=1e-5, rtol=1e-5), (
        float(jnp.max(jnp.abs(out2 - ref2))))

    print("KERNEL_OK")
</pallas_src>

<mosaic_0001>
module attributes {stable_mosaic.version = 11 : i64} {
  func.func @kernel(%arg0: i32, %arg1: memref<32x128xf32, #tpu.memory_space<vmem>>, %arg2: memref<128x32xf32, #tpu.memory_space<vmem>>, %arg3: memref<128x1xf32, #tpu.memory_space<vmem>>, %arg4: memref<128x128xf32, #tpu.memory_space<vmem>>, %arg5: memref<128x1xf32, #tpu.memory_space<vmem>>, %arg6: memref<8x128xf32, #tpu.memory_space<vmem>>, %arg7: memref<8x1xf32, #tpu.memory_space<vmem>>, %arg8: memref<8x128xf32, #tpu.memory_space<vmem>>) attributes {dimension_semantics = [#tpu.dimension_semantics<parallel>], iteration_bounds = array<i64: 1>, scalar_prefetch = 0 : i64, scratch_operands = 0 : i64, tpu.core_type = #tpu.core_type<tc>, window_params = [{transform_indices = @transform_0, window_bounds = array<i64: 32, 128>}, {pipeline_mode = #tpu.pipeline_mode<synchronous>, transform_indices = @transform_1, window_bounds = array<i64: 128, 32>}, {pipeline_mode = #tpu.pipeline_mode<synchronous>, transform_indices = @transform_2, window_bounds = array<i64: 128, 1>}, {pipeline_mode = #tpu.pipeline_mode<synchronous>, transform_indices = @transform_3, window_bounds = array<i64: 128, 128>}, {pipeline_mode = #tpu.pipeline_mode<synchronous>, transform_indices = @transform_4, window_bounds = array<i64: 128, 1>}, {pipeline_mode = #tpu.pipeline_mode<synchronous>, transform_indices = @transform_5, window_bounds = array<i64: 8, 128>}, {pipeline_mode = #tpu.pipeline_mode<synchronous>, transform_indices = @transform_6, window_bounds = array<i64: 8, 1>}, {transform_indices = @transform_7, window_bounds = array<i64: 8, 128>}]} {
    %c0 = arith.constant 0 : index
    %c0_0 = arith.constant 0 : index
    %0 = vector.load %arg1[%c0, %c0_0] : memref<32x128xf32, #tpu.memory_space<vmem>>, vector<32x128xf32>
    %c0_1 = arith.constant 0 : index
    %c0_2 = arith.constant 0 : index
    %1 = vector.load %arg2[%c0_1, %c0_2] : memref<128x32xf32, #tpu.memory_space<vmem>>, vector<128x32xf32>
    %c0_3 = arith.constant 0 : index
    %c0_4 = arith.constant 0 : index
    %2 = vector.load %arg3[%c0_3, %c0_4] : memref<128x1xf32, #tpu.memory_space<vmem>>, vector<128x1xf32>
    %cst = arith.constant dense<0.000000e+00> : vector<128x128xf32>
    %3 = tpu.matmul %1, %0, %cst {dimension_numbers = #tpu.dot_dimension_numbers<[1], [0], [0], [1], [0, 0, 1, 1], [], []>} : vector<128x32xf32>, vector<32x128xf32>, vector<128x128xf32> -> vector<128x128xf32>
    %4 = vector.broadcast %2 : vector<128x1xf32> to vector<128x128xf32>
    %5 = arith.addf %3, %4 : vector<128x128xf32>
    %cst_5 = arith.constant 0.000000e+00 : f32
    %6 = vector.broadcast %cst_5 : f32 to vector<128x128xf32>
    %7 = arith.maximumf %5, %6 : vector<128x128xf32>
    %c0_6 = arith.constant 0 : index
    %c0_7 = arith.constant 0 : index
    %8 = vector.load %arg4[%c0_6, %c0_7] : memref<128x128xf32, #tpu.memory_space<vmem>>, vector<128x128xf32>
    %c0_8 = arith.constant 0 : index
    %c0_9 = arith.constant 0 : index
    %9 = vector.load %arg5[%c0_8, %c0_9] : memref<128x1xf32, #tpu.memory_space<vmem>>, vector<128x1xf32>
    %cst_10 = arith.constant dense<0.000000e+00> : vector<128x128xf32>
    %10 = tpu.matmul %8, %7, %cst_10 {dimension_numbers = #tpu.dot_dimension_numbers<[1], [0], [0], [1], [0, 0, 1, 1], [], []>} : vector<128x128xf32>, vector<128x128xf32>, vector<128x128xf32> -> vector<128x128xf32>
    %11 = vector.broadcast %9 : vector<128x1xf32> to vector<128x128xf32>
    %12 = arith.addf %10, %11 : vector<128x128xf32>
    %cst_11 = arith.constant 0.000000e+00 : f32
    %13 = vector.broadcast %cst_11 : f32 to vector<128x128xf32>
    %14 = arith.maximumf %12, %13 : vector<128x128xf32>
    %c0_12 = arith.constant 0 : index
    %c0_13 = arith.constant 0 : index
    %15 = vector.load %arg6[%c0_12, %c0_13] : memref<8x128xf32, #tpu.memory_space<vmem>>, vector<8x128xf32>
    %c0_14 = arith.constant 0 : index
    %c0_15 = arith.constant 0 : index
    %16 = vector.load %arg7[%c0_14, %c0_15] : memref<8x1xf32, #tpu.memory_space<vmem>>, vector<8x1xf32>
    %cst_16 = arith.constant dense<0.000000e+00> : vector<8x128xf32>
    %17 = tpu.matmul %15, %14, %cst_16 {dimension_numbers = #tpu.dot_dimension_numbers<[1], [0], [0], [1], [0, 0, 1, 1], [], []>} : vector<8x128xf32>, vector<128x128xf32>, vector<8x128xf32> -> vector<8x128xf32>
    %18 = vector.broadcast %16 : vector<8x1xf32> to vector<8x128xf32>
    %19 = arith.addf %17, %18 : vector<8x128xf32>
    %c0_17 = arith.constant 0 : index
    %c0_18 = arith.constant 0 : index
    %20 = vector.load %arg8[%c0_17, %c0_18] : memref<8x128xf32, #tpu.memory_space<vmem>>, vector<8x128xf32>
    tpu.vector_store %arg8[%c0_17, %c0_18], %19 {strides = array<i32>} : memref<8x128xf32, #tpu.memory_space<vmem>>, vector<8x128xf32>,
    return
  }
  func.func @transform_0(%arg0: i32) -> (i32, i32) {
    %c0_i32 = arith.constant 0 : i32
    %c0_i32_0 = arith.constant 0 : i32
    return %c0_i32, %arg0 : i32, i32
  }
  func.func @transform_1(%arg0: i32) -> (i32, i32) {
    %c0_i32 = arith.constant 0 : i32
    %c0_i32_0 = arith.constant 0 : i32
    %c0_i32_1 = arith.constant 0 : i32
    return %c0_i32, %c0_i32_0 : i32, i32
  }
  func.func @transform_2(%arg0: i32) -> (i32, i32) {
    %c0_i32 = arith.constant 0 : i32
    %c0_i32_0 = arith.constant 0 : i32
    %c0_i32_1 = arith.constant 0 : i32
    return %c0_i32, %c0_i32_0 : i32, i32
  }
  func.func @transform_3(%arg0: i32) -> (i32, i32) {
    %c0_i32 = arith.constant 0 : i32
    %c0_i32_0 = arith.constant 0 : i32
    %c0_i32_1 = arith.constant 0 : i32
    return %c0_i32, %c0_i32_0 : i32, i32
  }
  func.func @transform_4(%arg0: i32) -> (i32, i32) {
    %c0_i32 = arith.constant 0 : i32
    %c0_i32_0 = arith.constant 0 : i32
    %c0_i32_1 = arith.constant 0 : i32
    return %c0_i32, %c0_i32_0 : i32, i32
  }
  func.func @transform_5(%arg0: i32) -> (i32, i32) {
    %c0_i32 = arith.constant 0 : i32
    %c0_i32_0 = arith.constant 0 : i32
    %c0_i32_1 = arith.constant 0 : i32
    return %c0_i32, %c0_i32_0 : i32, i32
  }
  func.func @transform_6(%arg0: i32) -> (i32, i32) {
    %c0_i32 = arith.constant 0 : i32
    %c0_i32_0 = arith.constant 0 : i32
    %c0_i32_1 = arith.constant 0 : i32
    return %c0_i32, %c0_i32_0 : i32, i32
  }
  func.func @transform_7(%arg0: i32) -> (i32, i32) {
    %c0_i32 = arith.constant 0 : i32
    %c0_i32_0 = arith.constant 0 : i32
    return %c0_i32, %arg0 : i32, i32
  }
}

</mosaic_0001>

<bundles_post_ra>
// kernel: _ddbl_forward_jit.1
= control target key start
LH: loop header
LB: loop body
LE: loop exit
PB: predicated region body
PF: predicated region fallthrough
CT: control target
= control target key end

     0   :  { %vm142_vm0 = vcmask 261120   ;;  %v920_v2 = vmov 0   ;;  %vm922_vm1 = vmmov 0   ;;  %s1233_s0 = inlined_call_operand.vmem [shape: f32[32,16], index: 0, kind: input, shape index: {}]   ;;  %s1234_s1 = inlined_call_operand.vmem [shape: f32[128,32], index: 1, kind: input, shape index: {}]   ;;  %s1235_s2 = inlined_call_operand.vmem [shape: f32[128,1], index: 2, kind: input, shape index: {}]   ;;  %s1236_s4 = inlined_call_operand.vmem [shape: f32[128,1], index: 4, kind: input, shape index: {}]   ;;  %s1237_s6 = inlined_call_operand.vmem [shape: f32[8,1], index: 6, kind: input, shape index: {}]   ;;  %s1238_s3 = inlined_call_operand.vmem [shape: f32[128,128], index: 3, kind: input, shape index: {}]   ;;  %s1239_s5 = inlined_call_operand.vmem [shape: f32[8,128], index: 5, kind: input, shape index: {}]   ;;  %s1240_s7 = inlined_call_operand.vmem [shape: f32[8,16], index: 7, kind: output, shape index: {}]  }
   0x1   :  { %v29_v0 = vld [vmem:[%s1233_s0 + $0x18] sm:$0xff]  ;;  %v28_v1 = vld [vmem:[%s1233_s0 + $0x10] sm:$0xff]  ;;  %918 = vset.pattern.permute.xlu0 %v920_v2  ;;  %919 = vset.pattern.permute.xlu1 %v920_v2  ;;  %v30_v3 = vld [vmem:[%s1234_s1] sm:$0xff] }
   0x2   :  { %792 = vmatprep.subr.mxu0 %v29_v0  ;;  %v27_v4 = vld [vmem:[%s1233_s0 + $0x8] sm:$0xff]  ;;  %800 = vmatprep.mubr.msk.f32.mxu0 %vm142_vm0, %v30_v3  ;;  %v26_v5 = vld [vmem:[%s1233_s0] sm:$0xff]  ;;  %v61_v7 = vld [vmem:[%s1235_s2 + $0x78] sm:$0xff] }
   0x3   :  { %793 = vmatpush3.msra.mxu0 %v29_v0  ;;  %v31_v6 = vld [vmem:[%s1234_s1 + $0x8] sm:$0xff]  ;;  %v32_v8 = vld [vmem:[%s1234_s1 + $0x10] sm:$0xff]  ;;  %139 = vperm.xlu0 %918, %v61_v7   ;;  %v58_v11 = vld [vmem:[%s1235_s2 + $0x60] sm:$0xff] }
   0x4   :  { %794 = vmatprep.subr.mxu0 %v28_v1  ;;  %v59_v9 = vld [vmem:[%s1235_s2 + $0x68] sm:$0xff]  ;;  %v60_v10 = vld [vmem:[%s1235_s2 + $0x70] sm:$0xff]  ;;  %v33_v12 = vld [vmem:[%s1234_s1 + $0x18] sm:$0xff] }
   0x5   :  { %795 = vmatpush3.msra.mxu0 %v28_v1  ;;  %129 = vperm.xlu1 %919, %v59_v9   ;;  %v34_v13 = vld [vmem:[%s1234_s1 + $0x20] sm:$0xff]  ;;  %v57_v14 = vld [vmem:[%s1235_s2 + $0x58] sm:$0xff]  ;;  %v56_v15 = vld [vmem:[%s1235_s2 + $0x50] sm:$0xff] }
   0x6   :  { %796 = vmatprep.subr.mxu0 %v27_v4  ;;  %v35_v16 = vld [vmem:[%s1234_s1 + $0x28] sm:$0xff]  ;;  %v36_v17 = vld [vmem:[%s1234_s1 + $0x30] sm:$0xff]  ;;  %v54_v19 = vld [vmem:[%s1235_s2 + $0x40] sm:$0xff] }
   0x7   :  { %797 = vmatpush3.msra.mxu0 %v27_v4  ;;  %134 = vperm.xlu0 %918, %v60_v10   ;;  %v55_v18 = vld [vmem:[%s1235_s2 + $0x48] sm:$0xff]  ;;  %v37_v20 = vld [vmem:[%s1234_s1 + $0x38] sm:$0xff]  ;;  %v38_v21 = vld [vmem:[%s1234_s1 + $0x40] sm:$0xff] }
   0x8   :  { %798 = vmatprep.subr.mxu0 %v26_v5  ;;  %v53_v22 = vld [vmem:[%s1235_s2 + $0x38] sm:$0xff]  ;;  %v52_v23 = vld [vmem:[%s1235_s2 + $0x30] sm:$0xff]  ;;  %v39_v24 = vld [vmem:[%s1234_s1 + $0x48] sm:$0xff] }
   0x9   :  { %799 = vmatpush3.msra.mxu0 %v26_v5  ;;  %124 = vperm.xlu1 %919, %v58_v11   ;;  %v40_v25 = vld [vmem:[%s1234_s1 + $0x50] sm:$0xff]  ;;  %v51_v26 = vld [vmem:[%s1235_s2 + $0x28] sm:$0xff]  ;;  %v50_v27 = vld [vmem:[%s1235_s2 + $0x20] sm:$0xff] }
   0xa   :  { %801 = vmatmul.mubr.msk.f32.vlgmr.msra.gmra.mxu0 %vm142_vm0, %v31_v6  ;;  %v41_v28 = vld [vmem:[%s1234_s1 + $0x58] sm:$0xff]  ;;  %v42_v29 = vld [vmem:[%s1234_s1 + $0x60] sm:$0xff]  ;;  %v48_v31 = vld [vmem:[%s1235_s2 + $0x10] sm:$0xff] }
   0xb   :  { %803 = vmatprep.mubr.msk.f32.mxu0 %vm142_vm0, %v32_v8  ;;  %119 = vperm.xlu0 %918, %v57_v14   ;;  %v49_v30 = vld [vmem:[%s1235_s2 + $0x18] sm:$0xff]  ;;  %v43_v32 = vld [vmem:[%s1234_s1 + $0x68] sm:$0xff]  ;;  %v44_v33 = vld [vmem:[%s1234_s1 + $0x70] sm:$0xff] }
   0xc   :  { %v47_v34 = vld [vmem:[%s1235_s2 + $0x8] sm:$0xff]  ;;  %v46_v35 = vld [vmem:[%s1235_s2] sm:$0xff]  ;;  %v45_v36 = vld [vmem:[%s1234_s1 + $0x78] sm:$0xff] }
   0xd   :  { %114 = vperm.xlu1 %919, %v56_v15   ;;  %v383_v37 = vld [vmem:[%s1236_s4 + $0x78] sm:$0xff]  ;;  %v382_v38 = vld [vmem:[%s1236_s4 + $0x70] sm:$0xff]  ;;  %v381_v39 = vld [vmem:[%s1236_s4 + $0x68] sm:$0xff] }
   0xe   :  { %804 = vmatmul.mubr.msk.f32.gmra.mxu0 %vm142_vm0, %v33_v12  ;;  %v380_v40 = vld [vmem:[%s1236_s4 + $0x60] sm:$0xff]  ;;  %v379_v41 = vld [vmem:[%s1236_s4 + $0x58] sm:$0xff]  ;;  %v378_v42 = vld [vmem:[%s1236_s4 + $0x50] sm:$0xff] }
   0xf   :  { %806 = vmatprep.mubr.msk.f32.mxu0 %vm142_vm0, %v34_v13  ;;  %109 = vperm.xlu0 %918, %v55_v18   ;;  %v377_v43 = vld [vmem:[%s1236_s4 + $0x48] sm:$0xff]  ;;  %v376_v44 = vld [vmem:[%s1236_s4 + $0x40] sm:$0xff]  ;;  %v375_v45 = vld [vmem:[%s1236_s4 + $0x38] sm:$0xff] }
  0x10   :  { %v374_v46 = vld [vmem:[%s1236_s4 + $0x30] sm:$0xff]  ;;  %v373_v47 = vld [vmem:[%s1236_s4 + $0x28] sm:$0xff]  ;;  %v372_v48 = vld [vmem:[%s1236_s4 + $0x20] sm:$0xff] }
  0x11   :  { %104 = vperm.xlu1 %919, %v54_v19   ;;  %v371_v49 = vld [vmem:[%s1236_s4 + $0x18] sm:$0xff]  ;;  %v370_v50 = vld [vmem:[%s1236_s4 + $0x10] sm:$0xff]  ;;  %v369_v51 = vld [vmem:[%s1236_s4 + $0x8] sm:$0xff] }
  0x12   :  { %807 = vmatmul.mubr.msk.f32.gmra.mxu0 %vm142_vm0, %v35_v16  ;;  %v368_v52 = vld [vmem:[%s1236_s4] sm:$0xff] }
  0x13   :  { %809 = vmatprep.mubr.msk.f32.mxu0 %vm142_vm0, %v36_v17  ;;  %99 = vperm.xlu0 %918, %v53_v22   ;;  %v626_v53 = vld [vmem:[%s1237_s6] sm:$0xff] }
  0x14   :  { %v352_v54 = vld [vmem:[%s1238_s3] sm:$0xff] }
  0x15   :  { %94 = vperm.xlu1 %919, %v52_v23   ;;  %856 = vmatprep.mubr.f32.mxu1 %v352_v54 }
  0x16   :  { %810 = vmatmul.mubr.msk.f32.gmra.mxu0 %vm142_vm0, %v37_v20 }
  0x17   :  { %812 = vmatprep.mubr.msk.f32.mxu0 %vm142_vm0, %v38_v21  ;;  %89 = vperm.xlu0 %918, %v51_v26  }
  0x19   :  { %84 = vperm.xlu1 %919, %v50_v27  }
  0x1a   :  { %813 = vmatmul.mubr.msk.f32.gmra.mxu0 %vm142_vm0, %v39_v24 }
  0x1b   :  { %815 = vmatprep.mubr.msk.f32.mxu0 %vm142_vm0, %v40_v25  ;;  %79 = vperm.xlu0 %918, %v49_v30  }
  0x1d   :  { %74 = vperm.xlu1 %919, %v48_v31  }
  0x1e   :  { %816 = vmatmul.mubr.msk.f32.gmra.mxu0 %vm142_vm0, %v41_v28 }
  0x1f   :  { %818 = vmatprep.mubr.msk.f32.mxu0 %vm142_vm0, %v42_v29  ;;  %69 = vperm.xlu0 %918, %v47_v34  }
  0x21   :  { %64 = vperm.xlu1 %919, %v46_v35  }
  0x22   :  { %819 = vmatmul.mubr.msk.f32.gmra.mxu0 %vm142_vm0, %v43_v32 }
  0x23   :  { %821 = vmatprep.mubr.msk.f32.mxu0 %vm142_vm0, %v44_v33  ;;  %461 = vperm.xlu0 %918, %v383_v37  }
  0x25   :  { %456 = vperm.xlu1 %919, %v382_v38  }
  0x26   :  { %822 = vmatmul.mubr.msk.f32.gmra.mxu0 %vm142_vm0, %v45_v36 }
  0x27   :  { %451 = vperm.xlu0 %918, %v381_v39  }
  0x29   :  { %446 = vperm.xlu1 %919, %v380_v40  }
  0x2b   :  { %441 = vperm.xlu0 %918, %v379_v41  }
  0x2d   :  { %436 = vperm.xlu1 %919, %v378_v42  }
  0x2f   :  { %431 = vperm.xlu0 %918, %v377_v43  }
  0x31   :  { %426 = vperm.xlu1 %919, %v376_v44  }
  0x33   :  { %421 = vperm.xlu0 %918, %v375_v45  }
  0x35   :  { %416 = vperm.xlu1 %919, %v374_v46  }
  0x37   :  { %411 = vperm.xlu0 %918, %v373_v47  }
  0x39   :  { %406 = vperm.xlu1 %919, %v372_v48  }
  0x3b   :  { %401 = vperm.xlu0 %918, %v371_v49  }
  0x3d   :  { %396 = vperm.xlu1 %919, %v370_v50  }
  0x3f   :  { %391 = vperm.xlu0 %918, %v369_v51  }
  0x41   :  { %386 = vperm.xlu1 %919, %v368_v52  }
  0x43   :  { %629 = vperm.xlu0 %918, %v626_v53  }
  0x7e   :  { %v140_v61 = vpop.permute.xlu0 %139 }
  0x80   :  { %v130_v63 = vpop.permute.xlu1 %129 }
  0x82   :  { %v135_v2 = vpop.permute.xlu0 %134 }
  0x84   :  { %v125_v4 = vpop.permute.xlu1 %124 }
  0x86   :  { %v120_v7 = vpop.permute.xlu0 %119 }
  0x88   :  { %v115_v9 = vpop.permute.xlu1 %114 }
  0x8a   :  { %v110_v13 = vpop.permute.xlu0 %109 }
  0x8c   :  { %v105_v18 = vpop.permute.xlu1 %104 }
  0x8e   :  { %v100_v23 = vpop.permute.xlu0 %99 }
  0x90   :  { %v95_v26 = vpop.permute.xlu1 %94 }
  0x92   :  { %v90_v31 = vpop.permute.xlu0 %89 }
  0x94   :  { %v85_v34 = vpop.permute.xlu1 %84 }
  0x96   :  { %v80_v39 = vpop.permute.xlu0 %79 }
  0x98   :  { %v75_v42 = vpop.permute.xlu1 %74 }
  0x9a   :  { %v70_v47 = vpop.permute.xlu0 %69 }
  0x9c   :  { %v65_v50 = vpop.permute.xlu1 %64 }
  0xca   :  { %v1141_v55 = vpop.f32.mrf.mxu0 }
  0xcb   :  { %v263_v48 = vadd.f32 %v1141_v55, %v70_v47  ;;  %v354_v55 = vld [vmem:[%s1238_s3 + $0x10] sm:$0xff] }
  0xcc   :  { %v1143_v56 = vpop.f32.mrf.mxu0 }
  0xcd   :  { %v258_v51 = vadd.f32 %v1143_v56, %v65_v50  ;;  %v337_v53 = vmax.f32 %v263_v48, 0.0  ;;  %v355_v56 = vld [vmem:[%s1238_s3 + $0x18] sm:$0xff] }
  0xce   :  { %v1145_v57 = vpop.f32.mrf.mxu0 }
  0xcf   :  { %v273_v43 = vadd.f32 %v1145_v57, %v80_v39  ;;  %v336_v54 = vmax.f32 %v258_v51, 0.0  ;;  %v353_v57 = vld [vmem:[%s1238_s3 + $0x8] sm:$0xff] }
  0xd0   :  { %v1147_v58 = vpop.f32.mrf.mxu0 }
  0xd1   :  { %v268_v45 = vadd.f32 %v1147_v58, %v75_v42  ;;  %v339_v49 = vmax.f32 %v273_v43, 0.0  ;;  %v356_v58 = vld [vmem:[%s1238_s3 + $0x20] sm:$0xff] }
  0xd2   :  { %v808_v59 = vpop.f32.mrf.mxu0 }
  0xd3   :  { %v283_v37 = vadd.f32 %v808_v59, %v90_v31  ;;  %v338_v52 = vmax.f32 %v268_v45, 0.0  ;;  %v357_v59 = vld [vmem:[%s1238_s3 + $0x28] sm:$0xff] }
  0xd4   :  { %v277_v60 = vpop.f32.mrf.mxu0 }
  0xd5   :  { %v278_v40 = vadd.f32 %v277_v60, %v85_v34  ;;  %v341_v44 = vmax.f32 %v283_v37, 0.0  ;;  %v358_v60 = vld [vmem:[%s1238_s3 + $0x30] sm:$0xff] }
  0xd6   :  { %v811_v62 = vpop.f32.mrf.mxu0 }
  0xd7   :  { %v293_v32 = vadd.f32 %v811_v62, %v100_v23  ;;  %v340_v46 = vmax.f32 %v278_v40, 0.0  ;;  %v360_v62 = vld [vmem:[%s1238_s3 + $0x40] sm:$0xff] }
  0xd8   :  { %v287_v0 = vpop.f32.mrf.mxu0 }
  0xd9   :  { %v288_v35 = vadd.f32 %v287_v0, %v95_v26  ;;  %v343_v38 = vmax.f32 %v293_v32, 0.0  ;;  %v362_v0 = vld [vmem:[%s1238_s3 + $0x50] sm:$0xff] }
  0xda   :  { %v814_v1 = vpop.f32.mrf.mxu0 }
  0xdb   :  { %v303_v27 = vadd.f32 %v814_v1, %v110_v13  ;;  %v342_v41 = vmax.f32 %v288_v35, 0.0  ;;  %v363_v1 = vld [vmem:[%s1238_s3 + $0x58] sm:$0xff]  ;;  %v462_v13 = vpop.permute.xlu0 %461 }
  0xdc   :  { %v297_v3 = vpop.f32.mrf.mxu0 }
  0xdd   :  { %v298_v29 = vadd.f32 %v297_v3, %v105_v18  ;;  %v345_v33 = vmax.f32 %v303_v27, 0.0  ;;  %v365_v3 = vld [vmem:[%s1238_s3 + $0x68] sm:$0xff] }
  0xde   :  { %v817_v5 = vpop.f32.mrf.mxu0 }
  0xdf   :  { %v313_v21 = vadd.f32 %v817_v5, %v120_v7  ;;  %v344_v36 = vmax.f32 %v298_v29, 0.0  ;;  %v367_v5 = vld [vmem:[%s1238_s3 + $0x78] sm:$0xff]  ;;  %v452_v18 = vpop.permute.xlu0 %451 }
  0xe0   :  { %v307_v6 = vpop.f32.mrf.mxu0 }
  0xe1   :  { %v308_v24 = vadd.f32 %v307_v6, %v115_v9  ;;  %v347_v28 = vmax.f32 %v313_v21, 0.0  ;;  %v921_v6 = vmov 0.0  }
  0xe2   :  { %v820_v8 = vpop.f32.mrf.mxu0  ;;  %880 = vmatprep.subr.mxu0 %v921_v6  ;;  %912 = vmatprep.mubr.msk.f32.mxu0 %vm922_vm1, %v921_v6 }
  0xe3   :  { %v323_v15 = vadd.f32 %v820_v8, %v130_v63  ;;  %v346_v30 = vmax.f32 %v308_v24, 0.0  ;;  %v361_v63 = vld [vmem:[%s1238_s3 + $0x48] sm:$0xff]  ;;  %v442_v23 = vpop.permute.xlu0 %441 }
  0xe4   :  { %v317_v10 = vpop.f32.mrf.mxu0 }
  0xe5   :  { %v318_v19 = vadd.f32 %v317_v10, %v125_v4  ;;  %v349_v22 = vmax.f32 %v323_v15, 0.0  ;;  %v366_v4 = vld [vmem:[%s1238_s3 + $0x70] sm:$0xff]  ;;  %v457_v15 = vpop.permute.xlu1 %456 }
  0xe6   :  { %v823_v11 = vpop.f32.mrf.mxu0 }
  0xe7   :  { %v333_v12 = vadd.f32 %v823_v11, %v140_v61  ;;  %v348_v25 = vmax.f32 %v318_v19, 0.0  ;;  %v359_v61 = vld [vmem:[%s1238_s3 + $0x38] sm:$0xff]  ;;  %v432_v29 = vpop.permute.xlu0 %431 }
  0xe8   :  { %v327_v14 = vpop.f32.mrf.mxu0 }
  0xe9   :  { %v351_v16 = vmax.f32 %v333_v12, 0.0  ;;  %v328_v17 = vadd.f32 %v327_v14, %v135_v2  ;;  %v364_v2 = vld [vmem:[%s1238_s3 + $0x60] sm:$0xff] }
  0xeb   :  { %v350_v20 = vmax.f32 %v328_v17, 0.0  ;;  %824 = vmatprep.subr.mxu1 %v351_v16  ;;  %v422_v39 = vpop.permute.xlu0 %421 }
  0xec   :  { %825 = vmatpush3.msra.mxu1 %v351_v16 }
  0xed   :  { %826 = vmatprep.subr.mxu1 %v350_v20 }
  0xee   :  { %827 = vmatpush3.msra.mxu1 %v350_v20  ;;  %v447_v20 = vpop.permute.xlu1 %446 }
  0xef   :  { %828 = vmatprep.subr.mxu1 %v349_v22  ;;  %v412_v47 = vpop.permute.xlu0 %411 }
  0xf0   :  { %829 = vmatpush3.msra.mxu1 %v349_v22 }
  0xf1   :  { %830 = vmatprep.subr.mxu1 %v348_v25 }
  0xf2   :  { %831 = vmatpush3.msra.mxu1 %v348_v25  ;;  %v437_v25 = vpop.permute.xlu1 %436 }
  0xf3   :  { %832 = vmatprep.subr.mxu1 %v347_v28 }
  0xf4   :  { %833 = vmatpush3.msra.mxu1 %v347_v28 }
  0xf5   :  { %834 = vmatprep.subr.mxu1 %v346_v30 }
  0xf6   :  { %835 = vmatpush3.msra.mxu1 %v346_v30  ;;  %v427_v34 = vpop.permute.xlu1 %426 }
  0xf7   :  { %836 = vmatprep.subr.mxu1 %v345_v33 }
  0xf8   :  { %837 = vmatpush3.msra.mxu1 %v345_v33 }
  0xf9   :  { %838 = vmatprep.subr.mxu1 %v344_v36 }
  0xfa   :  { %839 = vmatpush3.msra.mxu1 %v344_v36  ;;  %v417_v42 = vpop.permute.xlu1 %416 }
  0xfb   :  { %840 = vmatprep.subr.mxu1 %v343_v38 }
  0xfc   :  { %841 = vmatpush3.msra.mxu1 %v343_v38 }
  0xfd   :  { %842 = vmatprep.subr.mxu1 %v342_v41 }
  0xfe   :  { %843 = vmatpush3.msra.mxu1 %v342_v41  ;;  %v407_v50 = vpop.permute.xlu1 %406 }
  0xff   :  { %844 = vmatprep.subr.mxu1 %v341_v44 }
 0x100   :  { %845 = vmatpush3.msra.mxu1 %v341_v44 }
 0x101   :  { %846 = vmatprep.subr.mxu1 %v340_v46 }
 0x102   :  { %847 = vmatpush3.msra.mxu1 %v340_v46 }
 0x103   :  { %848 = vmatprep.subr.mxu1 %v339_v49 }
 0x104   :  { %849 = vmatpush3.msra.mxu1 %v339_v49 }
 0x105   :  { %850 = vmatprep.subr.mxu1 %v338_v52 }
 0x106   :  { %851 = vmatpush3.msra.mxu1 %v338_v52 }
 0x107   :  { %852 = vmatprep.subr.mxu1 %v337_v53 }
 0x108   :  { %853 = vmatpush3.msra.mxu1 %v337_v53 }
 0x109   :  { %854 = vmatprep.subr.mxu1 %v336_v54 }
 0x10a   :  { %855 = vmatpush3.msra.mxu1 %v336_v54 }
 0x10b   :  { %857 = vmatmul.mubr.f32.vlgmr.msra.gmra.mxu1 %v353_v57  ;;  %v402_v57 = vpop.permute.xlu0 %401 }
 0x10c   :  { %859 = vmatprep.mubr.f32.mxu1 %v354_v55 }
 0x10f   :  { %860 = vmatmul.mubr.f32.gmra.mxu1 %v355_v56 }
 0x110   :  { %862 = vmatprep.mubr.f32.mxu1 %v356_v58  ;;  %v397_v58 = vpop.permute.xlu1 %396 }
 0x113   :  { %863 = vmatmul.mubr.f32.gmra.mxu1 %v357_v59 }
 0x114   :  { %865 = vmatprep.mubr.f32.mxu1 %v358_v60 }
 0x117   :  { %866 = vmatmul.mubr.f32.gmra.mxu1 %v359_v61 }
 0x118   :  { %868 = vmatprep.mubr.f32.mxu1 %v360_v62 }
 0x11b   :  { %869 = vmatmul.mubr.f32.gmra.mxu1 %v361_v63  ;;  %v392_v63 = vpop.permute.xlu0 %391 }
 0x11c   :  { %871 = vmatprep.mubr.f32.mxu1 %v362_v0 }
 0x11f   :  { %872 = vmatmul.mubr.f32.gmra.mxu1 %v363_v1 }
 0x120   :  { %874 = vmatprep.mubr.f32.mxu1 %v364_v2  ;;  %v387_v2 = vpop.permute.xlu1 %386 }
 0x123   :  { %875 = vmatmul.mubr.f32.gmra.mxu1 %v365_v3 }
 0x124   :  { %877 = vmatprep.mubr.f32.mxu1 %v366_v4 }
 0x127   :  { %878 = vmatmul.mubr.f32.gmra.mxu1 %v367_v5 }
 0x1cb   :  { %v1200_v7 = vpop.f32.mrf.mxu1 }
 0x1cc   :  { %v536_v0 = vadd.f32 %v1200_v7, %v392_v63  ;;  %v625_v7 = vld [vmem:[%s1239_s5] sm:$0xff] }
 0x1cd   :  { %v1202_v8 = vpop.f32.mrf.mxu1 }
 0x1ce   :  { %v531_v3 = vadd.f32 %v1202_v8, %v387_v2  ;;  %v610_v5 = vmax.f32 %v536_v0, 0.0 }
 0x1cf   :  { %v1204_v9 = vpop.f32.mrf.mxu1 }
 0x1d0   :  { %v546_v59 = vadd.f32 %v1204_v9, %v402_v57  ;;  %v609_v9 = vmax.f32 %v531_v3, 0.0 }
 0x1d1   :  { %v1206_v10 = vpop.f32.mrf.mxu1 }
 0x1d2   :  { %v541_v61 = vadd.f32 %v1206_v10, %v397_v58  ;;  %v612_v1 = vmax.f32 %v546_v59, 0.0  ;;  %v630_v10 = vpop.permute.xlu0 %629 }
 0x1d3   :  { %v864_v11 = vpop.f32.mrf.mxu1 }
 0x1d4   :  { %v556_v53 = vadd.f32 %v864_v11, %v412_v47  ;;  %v611_v4 = vmax.f32 %v541_v61, 0.0 }
 0x1d5   :  { %v550_v12 = vpop.f32.mrf.mxu1 }
 0x1d6   :  { %v551_v55 = vadd.f32 %v550_v12, %v407_v50  ;;  %v614_v60 = vmax.f32 %v556_v53, 0.0 }
 0x1d7   :  { %v867_v14 = vpop.f32.mrf.mxu1 }
 0x1d8   :  { %v566_v48 = vadd.f32 %v867_v14, %v422_v39  ;;  %v613_v62 = vmax.f32 %v551_v55, 0.0 }
 0x1d9   :  { %v560_v16 = vpop.f32.mrf.mxu1 }
 0x1da   :  { %v561_v51 = vadd.f32 %v560_v16, %v417_v42  ;;  %v616_v54 = vmax.f32 %v566_v48, 0.0 }
 0x1db   :  { %v870_v17 = vpop.f32.mrf.mxu1 }
 0x1dc   :  { %v576_v43 = vadd.f32 %v870_v17, %v432_v29  ;;  %v615_v56 = vmax.f32 %v561_v51, 0.0 }
 0x1dd   :  { %v570_v19 = vpop.f32.mrf.mxu1 }
 0x1de   :  { %v571_v45 = vadd.f32 %v570_v19, %v427_v34  ;;  %v618_v49 = vmax.f32 %v576_v43, 0.0 }
 0x1df   :  { %v873_v21 = vpop.f32.mrf.mxu1 }
 0x1e0   :  { %v586_v37 = vadd.f32 %v873_v21, %v442_v23  ;;  %v617_v52 = vmax.f32 %v571_v45, 0.0 }
 0x1e1   :  { %v580_v22 = vpop.f32.mrf.mxu1 }
 0x1e2   :  { %v581_v40 = vadd.f32 %v580_v22, %v437_v25  ;;  %v620_v44 = vmax.f32 %v586_v37, 0.0 }
 0x1e3   :  { %v876_v24 = vpop.f32.mrf.mxu1 }
 0x1e4   :  { %v596_v31 = vadd.f32 %v876_v24, %v452_v18  ;;  %v619_v46 = vmax.f32 %v581_v40, 0.0 }
 0x1e5   :  { %v590_v26 = vpop.f32.mrf.mxu1 }
 0x1e6   :  { %v591_v35 = vadd.f32 %v590_v26, %v447_v20  ;;  %v622_v38 = vmax.f32 %v596_v31, 0.0 }
 0x1e7   :  { %v879_v27 = vpop.f32.mrf.mxu1 }
 0x1e8   :  { %v606_v28 = vadd.f32 %v879_v27, %v462_v13  ;;  %v621_v41 = vmax.f32 %v591_v35, 0.0 }
 0x1e9   :  { %v600_v30 = vpop.f32.mrf.mxu1 }
 0x1ea   :  { %v624_v32 = vmax.f32 %v606_v28, 0.0  ;;  %v601_v33 = vadd.f32 %v600_v30, %v457_v15 }
 0x1ec   :  { %v623_v36 = vmax.f32 %v601_v33, 0.0  ;;  %881 = vmatpush3.msra.mxu0 %v624_v32 }
 0x1ed   :  { %882 = vmatprep.subr.mxu0 %v921_v6 }
 0x1ee   :  { %883 = vmatpush3.msra.mxu0 %v623_v36 }
 0x1ef   :  { %884 = vmatprep.subr.mxu0 %v921_v6 }
 0x1f0   :  { %885 = vmatpush3.msra.mxu0 %v622_v38 }
 0x1f1   :  { %886 = vmatprep.subr.mxu0 %v921_v6 }
 0x1f2   :  { %887 = vmatpush3.msra.mxu0 %v621_v41 }
 0x1f3   :  { %888 = vmatprep.subr.mxu0 %v921_v6 }
 0x1f4   :  { %889 = vmatpush3.msra.mxu0 %v620_v44 }
 0x1f5   :  { %890 = vmatprep.subr.mxu0 %v921_v6 }
 0x1f6   :  { %891 = vmatpush3.msra.mxu0 %v619_v46 }
 0x1f7   :  { %892 = vmatprep.subr.mxu0 %v921_v6 }
 0x1f8   :  { %893 = vmatpush3.msra.mxu0 %v618_v49 }
 0x1f9   :  { %894 = vmatprep.subr.mxu0 %v921_v6 }
 0x1fa   :  { %895 = vmatpush3.msra.mxu0 %v617_v52 }
 0x1fb   :  { %896 = vmatprep.subr.mxu0 %v921_v6 }
 0x1fc   :  { %897 = vmatpush3.msra.mxu0 %v616_v54 }
 0x1fd   :  { %898 = vmatprep.subr.mxu0 %v921_v6 }
 0x1fe   :  { %899 = vmatpush3.msra.mxu0 %v615_v56 }
 0x1ff   :  { %900 = vmatprep.subr.mxu0 %v921_v6 }
 0x200   :  { %901 = vmatpush3.msra.mxu0 %v614_v60 }
 0x201   :  { %902 = vmatprep.subr.mxu0 %v921_v6 }
 0x202   :  { %903 = vmatpush3.msra.mxu0 %v613_v62 }
 0x203   :  { %904 = vmatprep.subr.mxu0 %v921_v6 }
 0x204   :  { %905 = vmatpush3.msra.mxu0 %v612_v1 }
 0x205   :  { %906 = vmatprep.subr.mxu0 %v921_v6 }
 0x206   :  { %907 = vmatpush3.msra.mxu0 %v611_v4 }
 0x207   :  { %908 = vmatprep.subr.mxu0 %v921_v6 }
 0x208   :  { %909 = vmatpush3.msra.mxu0 %v610_v5 }
 0x209   :  { %910 = vmatprep.subr.mxu0 %v921_v6 }
 0x20a   :  { %911 = vmatpush3.msra.mxu0 %v609_v9 }
 0x20b   :  { %913 = vmatmul.mubr.f32.vlgmr.msra.gmra.mxu0 %v625_v7 }
 0x2cb   :  { %v698_v8 = vpop.f32.mrf.mxu0 }
 0x2cc   :  { %v699_v11 = vadd.f32 %v698_v8, %v630_v10 }
 0x2cd   :  { %v914_v12 = vpop.f32.mrf.mxu0 }
 0x2ce   :  { %702 = vst [vmem:[%s1240_s7] sm:$0xff] %v699_v11 }

</bundles_post_ra>
